<compile_context>
chip_gen: v7x
topology: tpu7x:2x2x1
jax: 0.10.0
libtpu: 0.0.40
codegen_flags: <defaults>
</compile_context>

<pallas_src>
import functools

import jax
import jax.numpy as jnp
from jax.experimental import pallas as pl
from jax.experimental.pallas import tpu as pltpu


def _sine_kernel(x_ref, o_ref, *, w0):
    # Single full-tile, lane-dense load -> VPU mul -> EUP sin -> unmasked store.
    o_ref[...] = jnp.sin(x_ref[...] * w0)


def _round_up(a, b):
    return ((a + b - 1) // b) * b


def sine(x, w0=1.0, *, lane_width=512, max_block_rows=1024):
    """Elementwise sin(w0 * x), any input shape/dtype (float)."""
    orig_shape = x.shape
    orig_dtype = x.dtype
    n = x.size

    # ---- lay the data out lane-dense: (rows, lane_width) with lane_width % 128 == 0
    rows = pl.cdiv(n, lane_width)
    block_rows = min(max_block_rows, _round_up(max(rows, 1), 8))  # multiple of 8 sublanes
    padded_rows = _round_up(max(rows, 1), block_rows)
    padded_n = padded_rows * lane_width

    flat = jnp.pad(x.reshape(-1), (0, padded_n - n))
    x2d = flat.reshape(padded_rows, lane_width)

    grid = (padded_rows // block_rows,)

    itemsize = jnp.dtype(orig_dtype).itemsize
    cost = pl.CostEstimate(
        flops=n,                      # the w0 multiply
        transcendentals=n,            # sin on the EUP
        bytes_accessed=2 * n * itemsize,
    )

    out2d = pl.pallas_call(
        functools.partial(_sine_kernel, w0=float(w0)),
        out_shape=jax.ShapeDtypeStruct((padded_rows, lane_width), orig_dtype),
        grid_spec=pltpu.PrefetchScalarGridSpec(
            num_scalar_prefetch=0,
            grid=grid,
            in_specs=[pl.BlockSpec((block_rows, lane_width), lambda i: (i, 0))],
            out_specs=pl.BlockSpec((block_rows, lane_width), lambda i: (i, 0)),
        ),
        compiler_params=pltpu.CompilerParams(
            dimension_semantics=("parallel",),
        ),
        cost_estimate=cost,
    )(x2d)

    return out2d.reshape(-1)[:n].reshape(orig_shape)


def _reference(x, w0=1.0):
    return jnp.sin(w0 * x)


if __name__ == "__main__":
    key = jax.random.PRNGKey(0)
    B, C, H, W = 2, 4, 16, 16
    x = jax.random.uniform(key, (B, C, H, W), dtype=jnp.float32, minval=-2.0, maxval=2.0)
    w0 = 2.5  # non-trivial w0 to exercise the multiply path

    out = sine(x, w0=w0)
    out = jax.block_until_ready(out)

    ref = _reference(x, w0=w0)
    assert out.shape == x.shape
    assert out.dtype == x.dtype
    assert jnp.allclose(out, ref, atol=1e-6, rtol=1e-6)

    # also check the default-w0 path
    out_default = jax.block_until_ready(sine(x))
    assert jnp.allclose(out_default, _reference(x), atol=1e-6, rtol=1e-6)

    print("KERNEL_OK")
</pallas_src>

<mosaic_0001>
module attributes {stable_mosaic.version = 11 : i64} {
  func.func @_sine_kernel(%arg0: i32, %arg1: memref<8x512xf32, #tpu.memory_space<vmem>>, %arg2: memref<8x512xf32, #tpu.memory_space<vmem>>) attributes {dimension_semantics = [#tpu.dimension_semantics<parallel>], iteration_bounds = array<i64: 1>, scalar_prefetch = 0 : i64, scratch_operands = 0 : i64, tpu.core_type = #tpu.core_type<tc>, window_params = [{transform_indices = @transform_0, window_bounds = array<i64: 8, 512>}, {transform_indices = @transform_1, window_bounds = array<i64: 8, 512>}]} {
    %c0 = arith.constant 0 : index
    %c0_0 = arith.constant 0 : index
    %0 = vector.load %arg1[%c0, %c0_0] : memref<8x512xf32, #tpu.memory_space<vmem>>, vector<8x512xf32>
    %cst = arith.constant 2.500000e+00 : f32
    %1 = vector.broadcast %cst : f32 to vector<8x512xf32>
    %2 = arith.mulf %0, %1 : vector<8x512xf32>
    %3 = math.sin %2 : vector<8x512xf32>
    %c0_1 = arith.constant 0 : index
    %c0_2 = arith.constant 0 : index
    %4 = vector.load %arg2[%c0_1, %c0_2] : memref<8x512xf32, #tpu.memory_space<vmem>>, vector<8x512xf32>
    tpu.vector_store %arg2[%c0_1, %c0_2], %3 {strides = array<i32>} : memref<8x512xf32, #tpu.memory_space<vmem>>, vector<8x512xf32>,
    return
  }
  func.func @transform_0(%arg0: i32) -> (i32, i32) {
    %c0_i32 = arith.constant 0 : i32
    %c0_i32_0 = arith.constant 0 : i32
    return %arg0, %c0_i32 : i32, i32
  }
  func.func @transform_1(%arg0: i32) -> (i32, i32) {
    %c0_i32 = arith.constant 0 : i32
    %c0_i32_0 = arith.constant 0 : i32
    return %arg0, %c0_i32 : i32, i32
  }
}

</mosaic_0001>

<bundles_post_ra>
// kernel: tpu_custom_call.1
= control target key start
LH: loop header
LB: loop body
LE: loop exit
PB: predicated region body
PF: predicated region fallthrough
CT: control target
= control target key end

     0   :  { %6 = vsyncpa [#allocation3], 0  ;;  %s919_s0 = inlined_call_operand.hbm [shape: f32[8,512], index: 0, kind: input, shape index: {}]   ;;  %s920_s1 = inlined_call_operand.hbm [shape: f32[8,512], index: 1, kind: output, shape index: {}]  }
   0x1   :  { %7 = vsyncpa [#allocation4], 0  ;;  %s568_s6 = smov [#allocation2]   ;;  %s520_s10 = scalar_lea.hbm %s919_s0, 512 }
   0x2   :  { %s14_s7 = sshll.u32 %s568_s6, 4  ;;  %p521_p0 = scmp.ne.s32.totalorder %s919_s0, %s520_s10  ;;  %s15_s7 = int_to_ptr.vmem [resolvable:$true] %s14_s7 }
   0x3   :  { %p524_p1 = scmp.lt.u32.totalorder %s520_s10, %s919_s0 }
   0x5   :  { %p526_p2 = pnand %p524_p1, %p521_p0 }
   0x7   :  { %529 = shalt.err (!%p526_p2)
}
   0x8   :  { %s530_s15 = scalar_lea.vmem %s15_s7, 512  ;;  %p535_p4 = scmp.lt.s32.totalorder %s15_s7, %s15_s7 }
   0x9   :  { %p531_p3 = scmp.ne.s32.totalorder %s15_s7, %s530_s15  ;;  %p536_p5 = scmp.lt.s32.totalorder %s530_s15, %s530_s15 }
   0xb   :  { %p537_p6 = por %p536_p5, %p535_p4 }
   0xd   :  { %p538_p7 = pnand %p537_p6, %p531_p3 }
   0xf   :  { %541 = shalt.err (!%p538_p7)
}
  0x10   :  { %17 = dma.hbm_to_vmem [thread:$0]  %s919_s0, 512, %s15_s7, [#allocation3]  }
  0x11   :  { %564 = dma.done.wait [#allocation3], 512  }
  0x12   :  { %565 = vsyncadd [#allocation3], 4294966784  ;;  %v21_v0 = vld [vmem:[#allocation2] sm:$0xff]  ;;  %v22_v1 = vld [vmem:[#allocation2 + $0x8] sm:$0xff]  ;;  %v569_v34 = vmov 683565275  }
  0x13   :  { %v23_v2 = vld [vmem:[#allocation2 + $0x10] sm:$0xff]  ;;  %v598_v3 = vmul.f32 2.5, %v21_v0  ;;  %v600_v4 = vmul.f32 2.5, %v22_v1  ;;  %v570_v36 = vmov 2475754826   ;;  %s575_s0 = smov [#allocation5]  }
  0x14   :  { %v602_v5 = vmul.f32 2.5, %v23_v2  ;;  %v571_v38 = vmov 2131351028   ;;  %v572_v40 = vmov 2102212464   ;;  %s455_s18 = sshll.u32 %s575_s0, 4  ;;  %s456_s18 = int_to_ptr.vmem [resolvable:$true] %s455_s18 }
  0x15   :  { %v29_v6 = vand.u32 2147483647, %v598_v3  ;;  %v32_v7 = vand.u32 2139095040, %v598_v3  ;;  %v133_v8 = vand.u32 2147483647, %v600_v4  ;;  %v136_v9 = vand.u32 2139095040, %v600_v4  ;;  %p547_p9 = scmp.lt.s32.totalorder %s456_s18, %s456_s18 }
  0x16   :  { %v240_v14 = vand.u32 2139095040, %v602_v5  ;;  %v237_v22 = vand.u32 2147483647, %v602_v5  ;;  %v573_v42 = vmov 920167782   ;;  %vm31_vm13 = vcmp.lt.s32.totalorder %v598_v3, 0 }
  0x17   :  { %v33_v10 = vshrl.u32 %v32_v7, 23  ;;  %v36_v11 = vand.u32 8388607, %v29_v6  ;;  %v137_v12 = vshrl.u32 %v136_v9, 23  ;;  %v140_v13 = vand.u32 8388607, %v133_v8 }
  0x18   :  { %v241_v17 = vshrl.u32 %v240_v14, 23  ;;  %v620_v31 = vand.u32 8388607, %v237_v22  ;;  %v574_v50 = vmov 1326507024   ;;  %s542_s19 = scalar_lea.vmem %s456_s18, 512 }
  0x19   :  { %v464_v15 = vadd.s32 4294967169, %v33_v10  ;;  %v468_v16 = vadd.s32 4294967169, %v137_v12  ;;  %v37_v18 = vor.u32 8388608, %v36_v11  ;;  %v141_v20 = vor.u32 8388608, %v140_v13  ;;  %p543_p8 = scmp.ne.s32.totalorder %s456_s18, %s542_s19  ;;  %p548_p10 = scmp.lt.s32.totalorder %s542_s19, %s542_s19 }
  0x1a   :  { %v472_v23 = vadd.s32 4294967169, %v241_v17  ;;  %vm734_vm15 = vcmp.le.f32.partialorder %v29_v6, 0.7853982 }
  0x1b   :  { %v39_v19 = vadd.s32 1, %v464_v15  ;;  %v143_v21 = vadd.s32 1, %v468_v16  ;;  %v614_v27 = vshll.u32 %v37_v18, 8  ;;  %v616_v30 = vshll.u32 %v141_v20, 8  ;;  %p549_p11 = por %p548_p10, %p547_p9 }
  0x1c   :  { %v622_v32 = vadd.s32 1, %v472_v23 }
  0x1d   :  { %vm40_vm0 = vcmp.gt.s32.totalorder %v39_v19, 0  ;;  %vm144_vm1 = vcmp.gt.s32.totalorder %v143_v21, 0  ;;  %p550_p12 = pnand %p549_p11, %p543_p8 }
  0x1e   :  { %v41_v24 = vsel %vm40_vm0, %v39_v19, 0  ;;  %v145_v28 = vsel %vm144_vm1, %v143_v21, 0  ;;  %vm248_vm6 = vcmp.gt.s32.totalorder %v622_v32, 0 }
  0x1f   :  { %v42_v25 = vshrl.u32 %v41_v24, 5  ;;  %v43_v26 = vand.u32 31, %v41_v24  ;;  %v147_v29 = vand.u32 31, %v145_v28  ;;  %v629_v44 = vshrl.u32 %v145_v28, 5 }
  0x21   :  { %v44_v33 = vsub.s32 32, %v43_v26  ;;  %v46_v35 = vshll.u32 %v569_v34, %v43_v26  ;;  %v49_v37 = vshll.u32 %v570_v36, %v43_v26  ;;  %v52_v39 = vshll.u32 %v571_v38, %v43_v26 }
  0x22   :  { %v55_v41 = vshll.u32 %v572_v40, %v43_v26  ;;  %v58_v43 = vshll.u32 %v573_v42, %v43_v26  ;;  %vm61_vm2 = vcmp.lt.s32.totalorder %v42_v25, 1  ;;  %vm62_vm3 = vcmp.lt.s32.totalorder %v42_v25, 2 }
  0x23   :  { %v45_v45 = vshrl.u32 %v569_v34, %v44_v33  ;;  %v47_v46 = vshrl.u32 %v570_v36, %v44_v33  ;;  %v50_v47 = vshrl.u32 %v571_v38, %v44_v33  ;;  %v53_v48 = vshrl.u32 %v572_v40, %v44_v33 }
  0x24   :  { %v56_v49 = vshrl.u32 %v573_v42, %v44_v33  ;;  %v59_v51 = vshrl.u32 %v574_v50, %v44_v33  ;;  %vm64_vm4 = vcmp.lt.s32.totalorder %v42_v25, 4  ;;  %v148_v55 = vsub.s32 32, %v147_v29 }
  0x25   :  { %v48_v52 = vor.u32 %v47_v46, %v46_v35  ;;  %v51_v53 = vor.u32 %v50_v47, %v49_v37  ;;  %v54_v54 = vor.u32 %v53_v48, %v52_v39  ;;  %vm63_vm5 = vcmp.lt.s32.totalorder %v42_v25, 3 }
  0x26   :  { %v57_v56 = vor.u32 %v56_v49, %v55_v41  ;;  %v60_v57 = vor.u32 %v59_v51, %v58_v43  ;;  %v150_v58 = vshll.u32 %v569_v34, %v147_v29  ;;  %v153_v2 = vshll.u32 %v570_v36, %v147_v29  ;;  %v24_v49 = vld [vmem:[#allocation2 + $0x18] sm:$0xff] }
  0x27   :  { %v65_v59 = vsel %vm61_vm2, %v45_v45, %v48_v52  ;;  %v66_v60 = vsel %vm64_vm4, %v54_v54, 2102212464  ;;  %v69_v61 = vsel %vm61_vm2, %v48_v52, %v51_v53  ;;  %v73_v62 = vsel %vm61_vm2, %v51_v53, %v54_v54 }
  0x28   :  { %v67_v63 = vsel %vm63_vm5, %v51_v53, %v66_v60  ;;  %v70_v0 = vsel %vm64_vm4, %v57_v56, 920167782  ;;  %v74_v1 = vsel %vm64_vm4, %v60_v57, 1326507024  ;;  %v149_v10 = vshrl.u32 %v569_v34, %v148_v55 }
  0x29   :  { %v71_v7 = vsel %vm63_vm5, %v54_v54, %v70_v0  ;;  %v75_v9 = vsel %vm63_vm5, %v57_v56, %v74_v1  ;;  %v151_v11 = vshrl.u32 %v570_v36, %v148_v55  ;;  %v68_v12 = vsel %vm62_vm3, %v65_v59, %v67_v63 }
  0x2a   :  { %v72_v13 = vsel %vm62_vm3, %v69_v61, %v71_v7  ;;  %v76_v14 = vsel %vm62_vm3, %v73_v62, %v75_v9  ;;  %v154_v15 = vshrl.u32 %v571_v38, %v148_v55  ;;  %v156_v23 = vshll.u32 %v571_v38, %v147_v29 }
  0x2b   :  { %v650_v16 = vmul.u32.u64.low %v614_v27, %v76_v14  ;;  %v651_v17 = vmul.u32.u64.high %v614_v27, %v76_v14, %v650_v16  ;;  %v654_v18 = vmul.u32.u64.low %v614_v27, %v72_v13  ;;  %v655_v19 = vmul.u32.u64.high %v614_v27, %v72_v13, %v654_v18 }
  0x2c   :  { %v152_v20 = vor.u32 %v151_v11, %v150_v58  ;;  %v155_v21 = vor.u32 %v154_v15, %v153_v2  ;;  %v157_v24 = vshrl.u32 %v572_v40, %v148_v55  ;;  %v159_v25 = vshll.u32 %v572_v40, %v147_v29 }
  0x2d   :  { %v160_v26 = vshrl.u32 %v573_v42, %v148_v55  ;;  %v162_v28 = vshll.u32 %v573_v42, %v147_v29  ;;  %v163_v33 = vshrl.u32 %v574_v50, %v148_v55  ;;  %v84_v35 = vmul.u32 %v614_v27, %v68_v12 }
  0x2e   :  { %v158_v37 = vor.u32 %v157_v24, %v156_v23  ;;  %vm165_vm7 = vcmp.lt.s32.totalorder %v629_v44, 1  ;;  %vm166_vm8 = vcmp.lt.s32.totalorder %v629_v44, 2  ;;  %vm86_vm9 = vc.u32 %v651_v17, %v654_v18 }
  0x2f   :  { %v87_v39 = vadd.s32 1, %v655_v19  ;;  %v161_v41 = vor.u32 %v160_v26, %v159_v25  ;;  %vm167_vm10 = vcmp.lt.s32.totalorder %v629_v44, 3  ;;  %v164_v43 = vor.u32 %v163_v33, %v162_v28 }
  0x30   :  { %vm168_vm11 = vcmp.lt.s32.totalorder %v629_v44, 4  ;;  %v169_v29 = vsel %vm165_vm7, %v149_v10, %v152_v20  ;;  %v173_v45 = vsel %vm165_vm7, %v152_v20, %v155_v21  ;;  %v177_v48 = vsel %vm165_vm7, %v155_v21, %v158_v37 }
  0x31   :  { %v88_v27 = vsel %vm86_vm9, %v87_v39, %v655_v19  ;;  %v170_v46 = vsel %vm168_vm11, %v158_v37, 2102212464  ;;  %v174_v47 = vsel %vm168_vm11, %v161_v41, 920167782  ;;  %v178_v54 = vsel %vm168_vm11, %v164_v43, 1326507024 }
  0x32   :  { %v89_v51 = vadd.s32 %v88_v27, %v84_v35  ;;  %v171_v52 = vsel %vm167_vm10, %v155_v21, %v170_v46  ;;  %v175_v53 = vsel %vm167_vm10, %v158_v37, %v174_v47  ;;  %v179_v57 = vsel %vm167_vm10, %v161_v41, %v178_v54 }
  0x33   :  { %v172_v55 = vsel %vm166_vm8, %v169_v29, %v171_v52  ;;  %v176_v56 = vsel %vm166_vm8, %v173_v45, %v175_v53  ;;  %v249_v58 = vsel %vm248_vm6, %v622_v32, 0  ;;  %v180_v60 = vsel %vm166_vm8, %v177_v48, %v179_v57 }
  0x34   :  { %v90_v59 = vadd.s32 536870912, %v89_v51  ;;  %v689_v61 = vmul.u32.u64.low %v616_v30, %v176_v56  ;;  %v690_v62 = vmul.u32.u64.high %v616_v30, %v176_v56, %v689_v61  ;;  %v693_v63 = vmul.f32 2.5, %v24_v49 }
  0x35   :  { %v696_v0 = vmul.u32.u64.low %v616_v30, %v180_v60  ;;  %v697_v1 = vmul.u32.u64.high %v616_v30, %v180_v60, %v696_v0  ;;  %v245_v7 = vor.u32 8388608, %v620_v31  ;;  %v251_v9 = vand.u32 31, %v249_v58 }
  0x36   :  { %v91_v2 = vshrl.u32 %v90_v59, 30  ;;  %v188_v32 = vmul.u32 %v616_v30, %v172_v55  ;;  %v191_v44 = vadd.s32 1, %v690_v62  ;;  %v341_v12 = vand.u32 2147483647, %v693_v63 }
  0x37   :  { %v252_v11 = vsub.s32 32, %v251_v9  ;;  %vm190_vm12 = vc.u32 %v697_v1, %v689_v61  ;;  %v344_v13 = vand.u32 2139095040, %v693_v63  ;;  %v710_v15 = vshrl.u32 %v249_v58, 5 }
  0x38   :  { %v92_v10 = vshll.u32 %v91_v2, 30  ;;  %v192_v31 = vsel %vm190_vm12, %v191_v44, %v690_v62  ;;  %v712_v30 = vshll.u32 %v245_v7, 8  ;;  %v254_v19 = vshll.u32 %v569_v34, %v251_v9 }
  0x39   :  { %v193_v16 = vadd.s32 %v192_v31, %v188_v32  ;;  %v255_v20 = vshrl.u32 %v570_v36, %v252_v11  ;;  %v257_v21 = vshll.u32 %v570_v36, %v251_v9  ;;  %v258_v24 = vshrl.u32 %v571_v38, %v252_v11 }
  0x3a   :  { %v707_v14 = vsub.s32 %v89_v51, %v92_v10  ;;  %v260_v25 = vshll.u32 %v571_v38, %v251_v9  ;;  %v261_v26 = vshrl.u32 %v572_v40, %v252_v11  ;;  %v85_v28 = vadd.s32 %v654_v18, %v651_v17 }
  0x3b   :  { %v194_v33 = vadd.s32 536870912, %v193_v16  ;;  %v263_v35 = vshll.u32 %v572_v40, %v251_v9  ;;  %v345_v37 = vshrl.u32 %v344_v13, 23  ;;  %v115_v41 = vsub.s32 4, %v91_v2 }
  0x3c   :  { %v95_v23 = vsub.s32 0, %v707_v14  ;;  %v264_v43 = vshrl.u32 %v573_v42, %v252_v11  ;;  %vm272_vm14 = vcmp.lt.s32.totalorder %v710_v15, 4  ;;  %v253_v45 = vshrl.u32 %v569_v34, %v252_v11 }
  0x3d   :  { %v727_v29 = vshrl.u32 %v194_v33, 30  ;;  %v266_v27 = vshll.u32 %v573_v42, %v251_v9  ;;  %v267_v46 = vshrl.u32 %v574_v50, %v252_v11  ;;  %v256_v47 = vor.u32 %v255_v20, %v254_v19 }
  0x3e   :  { %v465_v39 = vmin.u32 %v95_v23, %v707_v14  ;;  %v259_v48 = vor.u32 %v258_v24, %v257_v21  ;;  %v262_v49 = vor.u32 %v261_v26, %v260_v25  ;;  %v265_v52 = vor.u32 %v264_v43, %v263_v35 }
  0x3f   :  { %v196_v51 = vshll.u32 %v727_v29, 30  ;;  %vm269_vm0 = vcmp.lt.s32.totalorder %v710_v15, 1  ;;  %vm271_vm1 = vcmp.lt.s32.totalorder %v710_v15, 3  ;;  %v268_v54 = vor.u32 %v267_v46, %v266_v27 }
  0x40   :  { %v97_v18 = vclz %v465_v39  ;;  %v274_v55 = vsel %vm272_vm14, %v262_v49, 2102212464  ;;  %v476_v6 = vadd.s32 4294967169, %v345_v37  ;;  %v116_v56 = vsel %vm31_vm13, %v115_v41, %v91_v2 }
  0x41   :  { %v745_v57 = vsub.s32 %v193_v16, %v196_v51  ;;  %vm270_vm2 = vcmp.lt.s32.totalorder %v710_v15, 2  ;;  %v278_v58 = vsel %vm272_vm14, %v265_v52, 920167782  ;;  %v273_v59 = vsel %vm269_vm0, %v253_v45, %v256_v47 }
  0x42   :  { %v466_v53 = vadd.s32 4294967294, %v97_v18  ;;  %v277_v60 = vsel %vm269_vm0, %v256_v47, %v259_v48  ;;  %v279_v62 = vsel %vm271_vm1, %v262_v49, %v278_v58  ;;  %v275_v7 = vsel %vm271_vm1, %v259_v48, %v274_v55 }
  0x43   :  { %v199_v2 = vsub.s32 0, %v745_v57  ;;  %v281_v9 = vsel %vm269_vm0, %v259_v48, %v262_v49  ;;  %v282_v11 = vsel %vm272_vm14, %v268_v54, 1326507024  ;;  %v280_v31 = vsel %vm270_vm2, %v277_v60, %v279_v62 }
  0x44   :  { %vm467_vm3 = vcmp.lt.s32.totalorder %v466_v53, 0  ;;  %v283_v16 = vsel %vm271_vm1, %v265_v52, %v282_v11  ;;  %v771_v19 = vand.u32 8388607, %v341_v12  ;;  %v351_v23 = vadd.s32 1, %v476_v6 }
  0x45   :  { %v100_v0 = vsel %vm467_vm3, 0, %v466_v53  ;;  %v469_v13 = vmin.u32 %v199_v2, %v745_v57  ;;  %v118_v24 = vsel %vm734_vm15, 0, %v116_v56  ;;  %v276_v26 = vsel %vm270_vm2, %v273_v59, %v275_v7 }
  0x46   :  { %v101_v32 = vsub.s32 32, %v100_v0  ;;  %v102_v10 = vshll.u32 %v707_v14, %v100_v0  ;;  %v105_v44 = vsub.s32 4294967266, %v100_v0  ;;  %v284_v14 = vsel %vm270_vm2, %v281_v9, %v283_v16 }
  0x47   :  { %v201_v25 = vclz %v469_v13  ;;  %v780_v37 = vmul.u32.u64.low %v712_v30, %v284_v14  ;;  %v781_v39 = vmul.u32.u64.high %v712_v30, %v284_v14, %v780_v37  ;;  %vm352_vm4 = vcmp.gt.s32.totalorder %v351_v23, 0 }
  0x48   :  { %v103_v20 = vshrl.u32 %v85_v28, %v101_v32  ;;  %v106_v21 = vadd.s32 127, %v105_v44  ;;  %v784_v28 = vmul.u32.u64.low %v712_v30, %v280_v31  ;;  %v785_v43 = vmul.u32.u64.high %v712_v30, %v280_v31, %v784_v28 }
  0x49   :  { %v470_v41 = vadd.s32 4294967294, %v201_v25  ;;  %v349_v46 = vor.u32 8388608, %v771_v19  ;;  %v353_v18 = vsel %vm352_vm4, %v351_v23, 0  ;;  %v789_v15 = vadd.s32 3, %v118_v24 }
  0x4a   :  { %v104_v33 = vor.u32 %v103_v20, %v102_v10  ;;  %v107_v35 = vshll.u32 %v106_v21, 23  ;;  %v189_v47 = vadd.s32 %v689_v61, %v697_v1  ;;  %v355_v48 = vand.u32 31, %v353_v18 }
  0x4b   :  { %vm471_vm5 = vcmp.lt.s32.totalorder %v470_v41, 0  ;;  %v292_v52 = vmul.u32 %v712_v30, %v276_v26  ;;  %vm294_vm6 = vc.u32 %v781_v39, %v784_v28  ;;  %vm135_vm7 = vcmp.lt.s32.totalorder %v600_v4, 0 }
  0x4c   :  { %v108_v45 = vor.u32 4788187, %v107_v35  ;;  %v111_v27 = vcvt.s32.f32 %v104_v33  ;;  %v204_v51 = vsel %vm471_vm5, 0, %v470_v41  ;;  %v295_v6 = vadd.s32 1, %v785_v43 }
  0x4d   :  { %v205_v53 = vsub.s32 32, %v204_v51  ;;  %v206_v54 = vshll.u32 %v745_v57, %v204_v51  ;;  %v209_v55 = vsub.s32 4294967266, %v204_v51  ;;  %v219_v61 = vsub.s32 4, %v727_v29 }
  0x4e   :  { %v109_v49 = vand.u32 2147483647, %v108_v45  ;;  %v800_v1 = vshrl.u32 %v353_v18, 5  ;;  %v356_v58 = vsub.s32 32, %v355_v48  ;;  %v296_v30 = vsel %vm294_vm6, %v295_v6, %v785_v43 }
  0x4f   :  { %v207_v59 = vshrl.u32 %v189_v47, %v205_v53  ;;  %v210_v60 = vadd.s32 127, %v209_v55  ;;  %v358_v62 = vshll.u32 %v569_v34, %v355_v48  ;;  %v297_v2 = vadd.s32 %v296_v30, %v292_v52 }
  0x50   :  { %v112_v56 = vmul.f32 %v111_v27, %v109_v49  ;;  %v359_v7 = vshrl.u32 %v570_v36, %v356_v58  ;;  %v361_v57 = vshll.u32 %v570_v36, %v355_v48  ;;  %vm808_vm8 = vcmp.le.f32.partialorder %v133_v8, 0.7853982 }
  0x51   :  { %v208_v32 = vor.u32 %v207_v59, %v206_v54  ;;  %v211_v10 = vshll.u32 %v210_v60, 23  ;;  %v362_v44 = vshrl.u32 %v571_v38, %v356_v58  ;;  %v364_v11 = vshll.u32 %v571_v38, %v355_v48 }
  0x52   :  { %v113_v0 = vxor.u32 2147483648, %v112_v56  ;;  %v298_v31 = vadd.s32 536870912, %v297_v2  ;;  %v365_v16 = vshrl.u32 %v572_v40, %v356_v58  ;;  %v367_v36 = vshll.u32 %v572_v40, %v355_v48 }
  0x53   :  { %v212_v19 = vor.u32 4788187, %v211_v10  ;;  %v215_v20 = vcvt.s32.f32 %v208_v32  ;;  %v360_v21 = vor.u32 %v359_v7, %v358_v62  ;;  %v363_v23 = vor.u32 %v362_v44, %v361_v57 }
  0x54   :  { %v114_v13 = vsel %vm31_vm13, %v113_v0, %v112_v56  ;;  %v821_v14 = vshrl.u32 %v298_v31, 30  ;;  %v368_v38 = vshrl.u32 %v573_v42, %v356_v58  ;;  %v370_v25 = vshll.u32 %v573_v42, %v355_v48 }
  0x55   :  { %v117_v8 = vsel %vm734_vm15, %v598_v3, %v114_v13  ;;  %v213_v24 = vand.u32 2147483647, %v212_v19  ;;  %v371_v26 = vshrl.u32 %v574_v50, %v356_v58  ;;  %v220_v40 = vsel %vm135_vm7, %v219_v61, %v727_v29 }
  0x56   :  { %504 = vcosq.f32 %v117_v8  ;;  %v300_v17 = vshll.u32 %v821_v14, 30  ;;  %v369_v33 = vor.u32 %v368_v38, %v367_v36  ;;  %vm373_vm9 = vcmp.lt.s32.totalorder %v800_v1, 1 }
  0x57   :  { %506 = vsinq.f32 %v117_v8  ;;  %v216_v35 = vmul.f32 %v215_v20, %v213_v24  ;;  %v357_v37 = vshrl.u32 %v569_v34, %v356_v58  ;;  %v366_v41 = vor.u32 %v365_v16, %v364_v11 }
  0x58   :  { %v832_v43 = vshll.u32 %v349_v46, 8  ;;  %v834_v45 = vsub.s32 %v297_v2, %v300_v17  ;;  %v372_v42 = vor.u32 %v371_v26, %v370_v25  ;;  %vm375_vm10 = vcmp.lt.s32.totalorder %v800_v1, 3 }
  0x59   :  { %vm376_vm11 = vcmp.lt.s32.totalorder %v800_v1, 4  ;;  %v217_v50 = vxor.u32 2147483648, %v216_v35  ;;  %vm374_vm12 = vcmp.lt.s32.totalorder %v800_v1, 2  ;;  %v381_v27 = vsel %vm373_vm9, %v360_v21, %v363_v23 }
  0x5a   :  { %v378_v29 = vsel %vm376_vm11, %v366_v41, 2102212464  ;;  %v123_v34 = vand.u32 3, %v789_v15  ;;  %v222_v46 = vsel %vm808_vm8, 0, %v220_v40  ;;  %v303_v18 = vsub.s32 0, %v834_v45 }
  0x5b   :  { %v382_v47 = vsel %vm376_vm11, %v369_v33, 920167782  ;;  %v218_v48 = vsel %vm135_vm7, %v217_v50, %v216_v35  ;;  %v377_v49 = vsel %vm373_vm9, %v357_v37, %v360_v21  ;;  %v379_v51 = vsel %vm375_vm10, %v363_v23, %v378_v29 }
  0x5c   :  { %v383_v15 = vsel %vm375_vm10, %v366_v41, %v382_v47  ;;  %v221_v52 = vsel %vm808_vm8, %v600_v4, %v218_v48  ;;  %v473_v53 = vmin.u32 %v303_v18, %v834_v45  ;;  %v385_v55 = vsel %vm373_vm9, %v363_v23, %v366_v41 }
  0x5d   :  { %v384_v54 = vsel %vm374_vm12, %v381_v27, %v383_v15  ;;  %508 = vcosq.f32 %v221_v52  ;;  %v386_v6 = vsel %vm376_vm11, %v372_v42, 1326507024  ;;  %vm124_vm13 = vcmp.lt.s32.totalorder %v123_v34, 2 }
  0x5e   :  { %v868_v56 = vmul.u32.u64.low %v832_v43, %v384_v54  ;;  %v869_v61 = vmul.u32.u64.high %v832_v43, %v384_v54, %v868_v56  ;;  %vm128_vm14 = vcmp.eq.s32.totalorder %v123_v34, 2  ;;  %510 = vsinq.f32 %v221_v52 }
  0x5f   :  { %v305_v59 = vclz %v473_v53  ;;  %vm125_vm15 = vcmp.eq.s32.totalorder %v123_v34, 0  ;;  %v226_v62 = vadd.s32 3, %v222_v46  ;;  %v387_v0 = vsel %vm375_vm10, %v369_v33, %v386_v6 }
  0x60   :  { %v505_v58 = vpop.eup %504  ;;  %v380_v57 = vsel %vm374_vm12, %v377_v49, %v379_v51  ;;  %v388_v9 = vsel %vm374_vm12, %v385_v55, %v387_v0  ;;  %vm121_vm0 = vweird.f32 %v598_v3  ;;  %v293_v13 = vadd.s32 %v784_v28, %v781_v39 }
  0x61   :  { %v507_v60 = vpop.eup %506  ;;  %v129_v30 = vxor.u32 2147483648, %v505_v58  ;;  %v474_v7 = vadd.s32 4294967294, %v305_v59  ;;  %v880_v10 = vmul.u32.u64.low %v832_v43, %v388_v9  ;;  %v881_v44 = vmul.u32.u64.high %v832_v43, %v388_v9, %v880_v10 }
  0x62   :  { %v126_v2 = vxor.u32 2147483648, %v507_v60  ;;  %v399_v31 = vadd.s32 1, %v869_v61  ;;  %v227_v36 = vand.u32 3, %v226_v62  ;;  %v396_v1 = vmul.u32 %v832_v43, %v380_v57 }
  0x63   :  { %v130_v32 = vsel %vm128_vm14, %v129_v30, %v507_v60  ;;  %vm475_vm1 = vcmp.lt.s32.totalorder %v474_v7, 0  ;;  %vm398_vm2 = vc.u32 %v881_v44, %v868_v56  ;;  %vm225_vm6 = vweird.f32 %v600_v4 }
  0x64   :  { %v127_v11 = vsel %vm125_vm15, %v505_v58, %v126_v2  ;;  %v308_v8 = vsel %vm475_vm1, 0, %v474_v7  ;;  %v400_v28 = vsel %vm398_vm2, %v399_v31, %v869_v61  ;;  %vm232_vm3 = vcmp.eq.s32.totalorder %v227_v36, 2 }
  0x65   :  { %v131_v16 = vsel %vm124_vm13, %v127_v11, %v130_v32  ;;  %v309_v3 = vsub.s32 32, %v308_v8  ;;  %v310_v20 = vshll.u32 %v834_v45, %v308_v8  ;;  %v313_v21 = vsub.s32 4294967266, %v308_v8 }
  0x66   :  { %v132_v19 = vsel %vm121_vm0, nan, %v131_v16  ;;  %v401_v24 = vadd.s32 %v400_v28, %v396_v1  ;;  %vm229_vm4 = vcmp.eq.s32.totalorder %v227_v36, 0  ;;  %vm228_vm5 = vcmp.lt.s32.totalorder %v227_v36, 2 }
  0x67   :  { %445 = vst [vmem:[#allocation5] sm:$0xff] %v132_v19  ;;  %v311_v23 = vshrl.u32 %v293_v13, %v309_v3  ;;  %v314_v39 = vadd.s32 127, %v313_v21  ;;  %v509_v38 = vpop.eup %508  ;;  %v323_v27 = vsub.s32 4, %v821_v14  ;;  %vm239_vm7 = vcmp.lt.s32.totalorder %v602_v5, 0 }
  0x68   :  { %v511_v25 = vpop.eup %510  ;;  %v233_v26 = vxor.u32 2147483648, %v509_v38  ;;  %v402_v35 = vadd.s32 536870912, %v401_v24  ;;  %vm238_vm8 = vcmp.le.f32.partialorder %v237_v22, 0.7853982  ;;  %v397_v61 = vadd.s32 %v868_v56, %v881_v44 }
  0x69   :  { %v312_v40 = vor.u32 %v311_v23, %v310_v20  ;;  %v315_v17 = vshll.u32 %v314_v39, 23  ;;  %v230_v33 = vxor.u32 2147483648, %v511_v25  ;;  %v324_v48 = vsel %vm239_vm7, %v323_v27, %v821_v14 }
  0x6a   :  { %v234_v37 = vsel %vm232_vm3, %v233_v26, %v511_v25  ;;  %v403_v42 = vshrl.u32 %v402_v35, 30  ;;  %v326_v52 = vsel %vm238_vm8, 0, %v324_v48  ;;  %vm329_vm13 = vweird.f32 %v602_v5 }
  0x6b   :  { %v316_v41 = vor.u32 4788187, %v315_v17  ;;  %v319_v43 = vcvt.s32.f32 %v312_v40  ;;  %v231_v45 = vsel %vm229_vm4, %v509_v38, %v230_v33  ;;  %v330_v55 = vadd.s32 3, %v326_v52 }
  0x6c   :  { %v235_v50 = vsel %vm228_vm5, %v231_v45, %v234_v37  ;;  %v404_v46 = vshll.u32 %v403_v42, 30  ;;  %v427_v16 = vsub.s32 4, %v403_v42  ;;  %vm343_vm14 = vcmp.lt.s32.totalorder %v693_v63, 0 }
  0x6d   :  { %v317_v29 = vand.u32 2147483647, %v316_v41  ;;  %v236_v34 = vsel %vm225_vm6, nan, %v235_v50  ;;  %v331_v58 = vand.u32 3, %v330_v55  ;;  %vm342_vm15 = vcmp.le.f32.partialorder %v341_v12, 0.7853982 }
  0x6e   :  { %446 = vst [vmem:[#allocation5 + $0x8] sm:$0xff] %v236_v34  ;;  %v405_v47 = vsub.s32 %v401_v24, %v404_v46  ;;  %v428_v19 = vsel %vm343_vm14, %v427_v16, %v403_v42  ;;  %vm433_vm3 = vweird.f32 %v693_v63 }
  0x6f   :  { %v320_v18 = vmul.f32 %v319_v43, %v317_v29  ;;  %vm336_vm10 = vcmp.eq.s32.totalorder %v331_v58, 2  ;;  %vm333_vm11 = vcmp.eq.s32.totalorder %v331_v58, 0  ;;  %vm332_vm12 = vcmp.lt.s32.totalorder %v331_v58, 2 }
  0x70   :  { %v407_v49 = vsub.s32 0, %v405_v47  ;;  %v430_v20 = vsel %vm342_vm15, 0, %v428_v19 }
  0x71   :  { %v321_v4 = vxor.u32 2147483648, %v320_v18  ;;  %v434_v21 = vadd.s32 3, %v430_v20 }
  0x72   :  { %v477_v53 = vmin.u32 %v407_v49, %v405_v47 }
  0x73   :  { %v322_v51 = vsel %vm239_vm7, %v321_v4, %v320_v18  ;;  %v435_v23 = vand.u32 3, %v434_v21 }
  0x74   :  { %v325_v15 = vsel %vm238_vm8, %v602_v5, %v322_v51  ;;  %v409_v54 = vclz %v477_v53 }
  0x75   :  { %512 = vcosq.f32 %v325_v15  ;;  %vm440_vm0 = vcmp.eq.s32.totalorder %v435_v23, 2  ;;  %vm437_vm1 = vcmp.eq.s32.totalorder %v435_v23, 0  ;;  %vm436_vm2 = vcmp.lt.s32.totalorder %v435_v23, 2 }
  0x76   :  { %514 = vsinq.f32 %v325_v15  ;;  %v478_v6 = vadd.s32 4294967294, %v409_v54 }
  0x78   :  { %vm479_vm9 = vcmp.lt.s32.totalorder %v478_v6, 0 }
  0x79   :  { %v412_v22 = vsel %vm479_vm9, 0, %v478_v6 }
  0x7a   :  { %v413_v59 = vsub.s32 32, %v412_v22  ;;  %v414_v60 = vshll.u32 %v405_v47, %v412_v22  ;;  %v417_v14 = vsub.s32 4294967266, %v412_v22 }
  0x7c   :  { %v415_v30 = vshrl.u32 %v397_v61, %v413_v59  ;;  %v418_v62 = vadd.s32 127, %v417_v14 }
  0x7e   :  { %v416_v57 = vor.u32 %v415_v30, %v414_v60  ;;  %v419_v9 = vshll.u32 %v418_v62, 23 }
  0x7f   :  { %v513_v0 = vpop.eup %512 }
  0x80   :  { %v515_v2 = vpop.eup %514  ;;  %v337_v7 = vxor.u32 2147483648, %v513_v0  ;;  %v420_v10 = vor.u32 4788187, %v419_v9  ;;  %v423_v44 = vcvt.s32.f32 %v416_v57 }
  0x81   :  { %v334_v32 = vxor.u32 2147483648, %v515_v2 }
  0x82   :  { %v338_v56 = vsel %vm336_vm10, %v337_v7, %v515_v2  ;;  %v421_v31 = vand.u32 2147483647, %v420_v10 }
  0x83   :  { %v335_v11 = vsel %vm333_vm11, %v513_v0, %v334_v32 }
  0x84   :  { %v339_v13 = vsel %vm332_vm12, %v335_v11, %v338_v56  ;;  %v424_v8 = vmul.f32 %v423_v44, %v421_v31 }
  0x85   :  { %v340_v36 = vsel %vm329_vm13, nan, %v339_v13 }
  0x86   :  { %447 = vst [vmem:[#allocation5 + $0x10] sm:$0xff] %v340_v36  ;;  %v425_v1 = vxor.u32 2147483648, %v424_v8 }
  0x88   :  { %v426_v3 = vsel %vm343_vm14, %v425_v1, %v424_v8 }
  0x89   :  { %v429_v5 = vsel %vm342_vm15, %v693_v63, %v426_v3 }
  0x8a   :  { %516 = vcosq.f32 %v429_v5 }
  0x8b   :  { %518 = vsinq.f32 %v429_v5 }
  0x94   :  { %v517_v39 = vpop.eup %516 }
  0x95   :  { %v519_v28 = vpop.eup %518  ;;  %v441_v38 = vxor.u32 2147483648, %v517_v39 }
  0x96   :  { %v438_v24 = vxor.u32 2147483648, %v519_v28 }
  0x97   :  { %v442_v12 = vsel %vm440_vm0, %v441_v38, %v519_v28 }
  0x98   :  { %v439_v25 = vsel %vm437_vm1, %v517_v39, %v438_v24 }
  0x99   :  { %v443_v26 = vsel %vm436_vm2, %v439_v25, %v442_v12 }
  0x9a   :  { %v444_v40 = vsel %vm433_vm3, nan, %v443_v26 }
  0x9b   :  { %448 = vst [vmem:[#allocation5 + $0x18] sm:$0xff] %v444_v40 }
  0x9c   :  { %553 = shalt.err (!%p550_p12)
}
  0x9d   :  { %s554_s22 = scalar_lea.hbm %s920_s1, 512 }
  0x9e   :  { %p555_p13 = scmp.ne.s32.totalorder %s920_s1, %s554_s22  ;;  %p558_p0 = scmp.lt.u32.totalorder %s554_s22, %s920_s1 }
  0xa0   :  { %p560_p1 = pnand %p558_p0, %p555_p13 }
  0xa2   :  { %563 = shalt.err (!%p560_p1)
}
  0xa3   :  { %458 = dma.vmem_to_hbm [thread:$0]  %s456_s18, 512, %s920_s1, [#allocation4]  }
  0xa4   :  { %566 = dma.done.wait [#allocation4], 512  }
  0xa5   :  { %567 = vsyncadd [#allocation4], 4294966784 }
  0xa6   :  { %462 = vsyncpa [#allocation3], 1 }
  0xa7   :  { %463 = vsyncpa [#allocation4], 1 }

</bundles_post_ra>
